<compile_context>
chip_gen: v5e
topology: v5e:2x2
jax: 0.10.0
libtpu: 0.0.40
codegen_flags: <defaults>
</compile_context>

<pallas_src>
import jax
import jax.numpy as jnp
import numpy as np
from jax import lax
from jax.experimental import pallas as pl
from jax.experimental.pallas import tpu as pltpu

_BIG = np.int32(2 ** 30)


def _round_up(x, m):
    return ((x + m - 1) // m) * m


# --------------------------------------------------------------- argmax ----
def _argmax_kernel(logits_ref, pred_ref):
    """Channel argmax: (1, C, H, W) f32 logits -> (1, 1, H, W) i32 class map."""
    x = logits_ref[0]                              # (C, H, W)
    C = x.shape[0]
    best_val = x[0]
    best_idx = jnp.zeros(best_val.shape, jnp.int32)
    for k in range(1, C):                          # first-max tie-break (== argmax)
        upd = x[k] > best_val
        best_val = jnp.where(upd, x[k], best_val)
        best_idx = jnp.where(upd, jnp.int32(k), best_idx)
    pred_ref[...] = best_idx[None, None]


# ---------------------------------------- per-class CCL + MXU histograms ----
def _make_fn_size_kernel(H, W, Hp, Wp, bin_tile, nbins_out, prop_steps):
    num_chunks = nbins_out // bin_tile

    def kernel(pred_ref, tgt_ref, out_ref):
        c = pl.program_id(0) + 1                   # foreground class of this step

        pred = pred_ref[0, 0]                      # (Hp, Wp) i32, 0 in padding
        tgt = tgt_ref[0, 0]                        # (Hp, Wp) i32, 0 in padding

        tgt_mask = tgt == c                        # padding is background (c >= 1)
        pred_mask = pred == c

        row = lax.broadcasted_iota(jnp.int32, (Hp, Wp), 0)
        col = lax.broadcasted_iota(jnp.int32, (Hp, Wp), 1)
        big = jnp.full((Hp, Wp), _BIG, jnp.int32)
        # Initial label = raster id (in ORIGINAL HxW coordinates) + 1, so the
        # converged component id is the component's first raster pixel + 1
        # (ascending id == skimage `label` ordering).
        lab0 = jnp.where(tgt_mask, row * W + col + 1, big)

        def prop_step(lab):
            # Separable 3x3 min == 8-connected min-label propagation.  Roll
            # wrap-around is harmless thanks to the background pad row/column,
            # so no per-step validity selects are needed.
            m = jnp.minimum(lab, jnp.minimum(jnp.roll(lab, 1, axis=1),
                                             jnp.roll(lab, -1, axis=1)))
            m = jnp.minimum(m, jnp.minimum(jnp.roll(m, 1, axis=0),
                                           jnp.roll(m, -1, axis=0)))
            return jnp.where(tgt_mask, m, big)

        # Convergence-checked propagation: labels only ever decrease, so "no
        # change over a block of prop_steps steps" is a fixpoint.
        def cond(carry):
            return carry[1] > 0.0

        def body(carry):
            lab, _ = carry
            new = lab
            for _ in range(prop_steps):            # static unroll for the scheduler
                new = prop_step(new)
            diff = (new != lab).astype(jnp.float32)
            nchanged = jnp.sum(jnp.sum(diff, axis=1, keepdims=True),
                               axis=0, keepdims=True)[0, 0]
            return new, nchanged

        lab, _ = lax.while_loop(cond, body, (lab0, jnp.array(1.0, jnp.float32)))

        # Per-component histograms on the MXU: one bf16 one-hot matmul per bin
        # chunk yields sizes (row 0) and pred-overlap counts (row 1), exact in
        # f32 accumulation.  Chunking bounds VMEM to O(Hp*Wp*bin_tile).
        pred_b = pred_mask.astype(jnp.bfloat16)[:, None, :]       # (Hp, 1, Wp)
        sub = lax.broadcasted_iota(jnp.int32, (Hp, 2, Wp), 1)
        lhs = jnp.where(sub == 0, jnp.array(1, jnp.bfloat16), pred_b)   # (Hp, 2, Wp)
        lab_e = lab[:, None, :]                                   # (Hp, 1, Wp)

        # TODO(synk): for very large H*W switch this static chunk loop to a
        # lax.fori_loop with a pl.ds(start, bin_tile) dynamic store.
        for t in range(num_chunks):
            start = t * bin_tile
            bins = (lax.broadcasted_iota(jnp.int32, (1, bin_tile, 1), 1)
                    + (start + 1))                                # bin ids start+1..start+bin_tile
            onehot = (lab_e == bins).astype(jnp.bfloat16)         # (Hp, bin_tile, Wp)
            part = lax.dot_general(
                lhs, onehot,
                dimension_numbers=(((2,), (2,)), ((0,), (0,))),
                preferred_element_type=jnp.float32)               # (Hp, 2, bin_tile)
            out_ref[0, :, start:start + bin_tile] = jnp.sum(part, axis=0)

    return kernel


def false_negative_size_arrays(output, target, *, prop_steps=8):
    """Pallas-computed per-class (sizes, overlaps) tables, each (C-1, H*W)."""
    N, C, H, W = output.shape
    assert N == 1, "kernel assumes N == 1 (mirrors the reference squeeze(dim=0))"
    assert C >= 2

    # Channel argmax once, hoisted out of the per-class grid.
    pred = pl.pallas_call(
        _argmax_kernel,
        out_shape=jax.ShapeDtypeStruct((1, 1, H, W), jnp.int32),
        grid=(1,),
        in_specs=[pl.BlockSpec((1, C, H, W), lambda i: (0, 0, 0, 0))],
        out_specs=pl.BlockSpec((1, 1, H, W), lambda i: (0, 0, 0, 0)),
    )(output.astype(jnp.float32))

    # Pad class maps with background (0): makes roll wrap-around safe and the
    # lane axis 128-aligned / sublane axis 8-aligned.
    Hp = _round_up(H + 1, 8)
    Wp = _round_up(W + 1, 128)
    pad = ((0, 0), (0, 0), (0, Hp - H), (0, Wp - W))
    pred_p = jnp.pad(pred, pad)
    tgt_p = jnp.pad(target.astype(jnp.int32), pad)

    HW = H * W
    bin_tile = min(512, _round_up(HW, 128))        # lane-dense, VMEM-bounded chunks
    nbins_out = _round_up(HW, bin_tile)

    kernel = _make_fn_size_kernel(H, W, Hp, Wp, bin_tile, nbins_out, prop_steps)
    table = pl.pallas_call(
        kernel,
        out_shape=jax.ShapeDtypeStruct((C - 1, 2, nbins_out), jnp.float32),
        grid=(C - 1,),
        in_specs=[pl.BlockSpec((1, 1, Hp, Wp), lambda c: (0, 0, 0, 0)),
                  pl.BlockSpec((1, 1, Hp, Wp), lambda c: (0, 0, 0, 0))],
        out_specs=pl.BlockSpec((1, 2, nbins_out), lambda c: (c, 0, 0)),
        compiler_params=pltpu.CompilerParams(
            dimension_semantics=("parallel",)),
    )(pred_p, tgt_p)

    sizes = table[:, 0, :HW]
    overlaps = table[:, 1, :HW]
    return sizes, overlaps


def false_negative_size(output, target):
    """Mirrors FalseNegativeSize.forward: list (len C-1) of per-component FN sizes / 1000."""
    sizes, overlaps = false_negative_size_arrays(output, target)
    sizes = np.asarray(jax.device_get(sizes))
    overlaps = np.asarray(jax.device_get(overlaps))
    # TODO(synk): the variable-length list-of-lists return has no fixed-shape
    # array equivalent; it is assembled on host from the Pallas tables.
    scores = []
    for ci in range(sizes.shape[0]):
        score = []
        for k in range(sizes.shape[1]):            # ascending min-pixel id == raster order
            if sizes[ci, k] > 0 and overlaps[ci, k] == 0:
                score.append(float(sizes[ci, k]) / 1000.0)
        scores.append(score)
    return scores


def _reference_scores(output, target):
    """Pure-numpy replica of the PyTorch module (BFS connected components)."""
    out = np.asarray(output)
    tgt = np.asarray(target)
    _, C, H, W = out.shape
    pred = out.argmax(axis=1)[0]
    t = tgt[0, 0]
    scores = []
    for c in range(1, C):
        mask = t == c
        labimg = np.zeros((H, W), np.int32)
        nlab = 0
        for r in range(H):
            for cc in range(W):
                if mask[r, cc] and labimg[r, cc] == 0:
                    nlab += 1
                    stack = [(r, cc)]
                    labimg[r, cc] = nlab
                    while stack:
                        rr, c0 = stack.pop()
                        for dr in (-1, 0, 1):
                            for dc in (-1, 0, 1):
                                nr, nc = rr + dr, c0 + dc
                                if 0 <= nr < H and 0 <= nc < W and mask[nr, nc] and labimg[nr, nc] == 0:
                                    labimg[nr, nc] = nlab
                                    stack.append((nr, nc))
        pmask = pred == c
        score = []
        for k in range(1, nlab + 1):
            comp = labimg == k
            if not np.any(pmask & comp):
                score.append(float(comp.sum()) / 1000.0)
        scores.append(score)
    return scores


if __name__ == "__main__":
    key = jax.random.PRNGKey(0)
    k1, k2 = jax.random.split(key)
    N, C, H, W = 1, 4, 16, 16
    output = jax.random.normal(k1, (N, C, H, W), dtype=jnp.float32)
    target = jax.random.randint(k2, (N, 1, H, W), 0, C, dtype=jnp.int32)

    sizes, overlaps = false_negative_size_arrays(output, target)
    jax.block_until_ready((sizes, overlaps))

    got = false_negative_size(output, target)
    want = _reference_scores(output, target)
    assert len(got) == len(want)
    for g, w in zip(got, want):
        assert len(g) == len(w), (g, w)
        for a, b in zip(g, w):
            assert abs(a - b) < 1e-6, (g, w)

    print("KERNEL_OK")
</pallas_src>

<mosaic_0001>
module attributes {stable_mosaic.version = 11 : i64} {
  func.func @_argmax_kernel(%arg0: i32, %arg1: memref<1x4x16x16xf32, #tpu.memory_space<vmem>>, %arg2: memref<1x1x16x16xi32, #tpu.memory_space<vmem>>) attributes {dimension_semantics = [#tpu.dimension_semantics<arbitrary>], iteration_bounds = array<i64: 1>, scalar_prefetch = 0 : i64, scratch_operands = 0 : i64, tpu.core_type = #tpu.core_type<tc>, window_params = [{pipeline_mode = #tpu.pipeline_mode<synchronous>, transform_indices = @transform_0, window_bounds = array<i64: 1, 4, 16, 16>}, {pipeline_mode = #tpu.pipeline_mode<synchronous>, transform_indices = @transform_1, window_bounds = array<i64: 1, 1, 16, 16>}]} {
    %c0 = arith.constant 0 : index
    %c0_0 = arith.constant 0 : index
    %c0_1 = arith.constant 0 : index
    %c0_2 = arith.constant 0 : index
    %0 = vector.load %arg1[%c0, %c0_0, %c0_1, %c0_2] : memref<1x4x16x16xf32, #tpu.memory_space<vmem>>, vector<1x4x16x16xf32>
    %1 = vector.shape_cast %0 : vector<1x4x16x16xf32> to vector<4x16x16xf32>
    %2 = vector.extract_strided_slice %1 {offsets = [0, 0, 0], sizes = [1, 16, 16], strides = [1, 1, 1]} : vector<4x16x16xf32> to vector<1x16x16xf32>
    %3 = vector.shape_cast %2 : vector<1x16x16xf32> to vector<16x16xf32>
    %c0_i32 = arith.constant 0 : i32
    %4 = vector.broadcast %c0_i32 : i32 to vector<16x16xi32>
    %5 = vector.extract_strided_slice %1 {offsets = [1, 0, 0], sizes = [1, 16, 16], strides = [1, 1, 1]} : vector<4x16x16xf32> to vector<1x16x16xf32>
    %6 = vector.shape_cast %5 : vector<1x16x16xf32> to vector<16x16xf32>
    %7 = arith.cmpf ogt, %6, %3 : vector<16x16xf32>
    %8 = vector.extract_strided_slice %1 {offsets = [1, 0, 0], sizes = [1, 16, 16], strides = [1, 1, 1]} : vector<4x16x16xf32> to vector<1x16x16xf32>
    %9 = vector.shape_cast %8 : vector<1x16x16xf32> to vector<16x16xf32>
    %10 = arith.select %7, %9, %3 : vector<16x16xi1>, vector<16x16xf32>
    %c1_i32 = arith.constant 1 : i32
    %11 = vector.broadcast %c1_i32 : i32 to vector<16x16xi32>
    %12 = arith.select %7, %11, %4 : vector<16x16xi1>, vector<16x16xi32>
    %13 = vector.extract_strided_slice %1 {offsets = [2, 0, 0], sizes = [1, 16, 16], strides = [1, 1, 1]} : vector<4x16x16xf32> to vector<1x16x16xf32>
    %14 = vector.shape_cast %13 : vector<1x16x16xf32> to vector<16x16xf32>
    %15 = arith.cmpf ogt, %14, %10 : vector<16x16xf32>
    %16 = vector.extract_strided_slice %1 {offsets = [2, 0, 0], sizes = [1, 16, 16], strides = [1, 1, 1]} : vector<4x16x16xf32> to vector<1x16x16xf32>
    %17 = vector.shape_cast %16 : vector<1x16x16xf32> to vector<16x16xf32>
    %18 = arith.select %15, %17, %10 : vector<16x16xi1>, vector<16x16xf32>
    %c2_i32 = arith.constant 2 : i32
    %19 = vector.broadcast %c2_i32 : i32 to vector<16x16xi32>
    %20 = arith.select %15, %19, %12 : vector<16x16xi1>, vector<16x16xi32>
    %21 = vector.extract_strided_slice %1 {offsets = [3, 0, 0], sizes = [1, 16, 16], strides = [1, 1, 1]} : vector<4x16x16xf32> to vector<1x16x16xf32>
    %22 = vector.shape_cast %21 : vector<1x16x16xf32> to vector<16x16xf32>
    %23 = arith.cmpf ogt, %22, %18 : vector<16x16xf32>
    %c3_i32 = arith.constant 3 : i32
    %24 = vector.broadcast %c3_i32 : i32 to vector<16x16xi32>
    %25 = arith.select %23, %24, %20 : vector<16x16xi1>, vector<16x16xi32>
    %26 = vector.shape_cast %25 : vector<16x16xi32> to vector<1x1x16x16xi32>
    %c0_3 = arith.constant 0 : index
    %c0_4 = arith.constant 0 : index
    %c0_5 = arith.constant 0 : index
    %c0_6 = arith.constant 0 : index
    %27 = vector.load %arg2[%c0_3, %c0_4, %c0_5, %c0_6] : memref<1x1x16x16xi32, #tpu.memory_space<vmem>>, vector<1x1x16x16xi32>
    tpu.vector_store %arg2[%c0_3, %c0_4, %c0_5, %c0_6], %26 {strides = array<i32>} : memref<1x1x16x16xi32, #tpu.memory_space<vmem>>, vector<1x1x16x16xi32>,
    return
  }
  func.func @transform_0(%arg0: i32) -> (i32, i32, i32, i32) {
    %c0_i32 = arith.constant 0 : i32
    %c0_i32_0 = arith.constant 0 : i32
    %c0_i32_1 = arith.constant 0 : i32
    %c0_i32_2 = arith.constant 0 : i32
    %c0_i32_3 = arith.constant 0 : i32
    return %c0_i32, %c0_i32_0, %c0_i32_1, %c0_i32_2 : i32, i32, i32, i32
  }
  func.func @transform_1(%arg0: i32) -> (i32, i32, i32, i32) {
    %c0_i32 = arith.constant 0 : i32
    %c0_i32_0 = arith.constant 0 : i32
    %c0_i32_1 = arith.constant 0 : i32
    %c0_i32_2 = arith.constant 0 : i32
    %c0_i32_3 = arith.constant 0 : i32
    return %c0_i32, %c0_i32_0, %c0_i32_1, %c0_i32_2 : i32, i32, i32, i32
  }
}

</mosaic_0001>

<bundles_post_ra>
// kernel: tpu_custom_call.1
= control target key start
LH: loop header
LB: loop body
LE: loop exit
PB: predicated region body
PF: predicated region fallthrough
CT: control target
= control target key end

     0   :  { %6 = vsyncpa [#allocation3], 0  ;;  %s155_s0 = inlined_call_operand.hbm [shape: f32[1,4,16,16], index: 0, kind: input, shape index: {}]   ;;  %s156_s1 = inlined_call_operand.hbm [shape: s32[1,1,16,16], index: 1, kind: output, shape index: {}]  }
   0x1   :  { %7 = vsyncpa [#allocation4], 0  ;;  %s12_s8 = sshll.u32 %s155_s0, 4  ;;  %s128_s9 = smov [#allocation2]   ;;  %s13_s8 = int_to_ptr.hbm [resolvable:$true] %s12_s8 }
   0x2   :  { %s14_s10 = sshll.u32 %s128_s9, 4  ;;  %s129_s11 = smov 128   ;;  %s15_s10 = int_to_ptr.vmem [resolvable:$true] %s14_s10 }
   0x3   :  { %s130_s12 = smov 8  }
   0x4   :  { %20 = dma.hbm_to_vmem [thread:$0]  %s13_s8, 1024, %s15_s10, [#allocation3], %s129_s11, %s129_s11, %s130_s12  }
   0x5   :  { %124 = dma.done.wait [#allocation3], 1024  }
   0x6   :  { %125 = vsyncadd [#allocation3], 4294966272  ;;  %v25_v0 = vld [vmem:[#allocation2] sm:$0xff]  ;;  %v27_v1 = vld [vmem:[#allocation2 + $0x10] sm:$0xff]  ;;  %v131_v7 = vmov 0   ;;  %s132_s0 = smov [#allocation5]  }
   0x7   :  { %v29_v2 = vld [vmem:[#allocation2 + $0x20] sm:$0xff]  ;;  %vm33_vm0 = vcmp.gt.f32.partialorder %v27_v1, %v25_v0  ;;  %v26_v3 = vld [vmem:[#allocation2 + $0x8] sm:$0xff]  ;;  %v28_v4 = vld [vmem:[#allocation2 + $0x18] sm:$0xff]  ;;  %s56_s13 = sshll.u32 %s132_s0, 4  ;;  %s58_s16 = sshll.u32 %s156_s1, 4  ;;  %vm49_vm3 = vcmask 130048   ;;  %s57_s13 = int_to_ptr.vmem [resolvable:$true] %s56_s13  ;;  %s59_s16 = int_to_ptr.hbm [resolvable:$true] %s58_s16 }
   0x8   :  { %v31_v5 = vld [vmem:[#allocation2 + $0x30] sm:$0xff]  ;;  %v35_v6 = vsel %vm33_vm0, %v27_v1, %v25_v0  ;;  %v37_v8 = vsel %vm33_vm0, 1, %v131_v7  ;;  %v30_v9 = vld [vmem:[#allocation2 + $0x28] sm:$0xff]  ;;  %vm34_vm1 = vcmp.gt.f32.partialorder %v28_v4, %v26_v3  ;;  %v32_v10 = vld [vmem:[#allocation2 + $0x38] sm:$0xff] }
   0x9   :  { %vm39_vm2 = vcmp.gt.f32.partialorder %v29_v2, %v35_v6  ;;  %v36_v11 = vsel %vm34_vm1, %v28_v4, %v26_v3  ;;  %v38_v12 = vsel %vm34_vm1, 1, %v131_v7 }
   0xa   :  { %v41_v13 = vsel %vm39_vm2, %v29_v2, %v35_v6  ;;  %v43_v14 = vsel %vm39_vm2, 2, %v37_v8  ;;  %vm40_vm4 = vcmp.gt.f32.partialorder %v30_v9, %v36_v11 }
   0xb   :  { %vm45_vm5 = vcmp.gt.f32.partialorder %v31_v5, %v41_v13  ;;  %v42_v15 = vsel %vm40_vm4, %v30_v9, %v36_v11  ;;  %v44_v16 = vsel %vm40_vm4, 2, %v38_v12 }
   0xc   :  { %v47_v17 = vsel %vm45_vm5, 3, %v43_v14  ;;  %vm46_vm6 = vcmp.gt.f32.partialorder %v32_v10, %v42_v15 }
   0xd   :  { %50 = vst.msk [vmem:[#allocation5] sm:$0xff] %vm49_vm3, %v47_v17  ;;  %v48_v18 = vsel %vm46_vm6, 3, %v44_v16 }
   0xe   :  { %51 = vst.msk [vmem:[#allocation5 + $0x8] sm:$0xff] %vm49_vm3, %v48_v18 }
   0xf   :  { %64 = dma.vmem_to_hbm [thread:$0]  %s57_s13, 256, %s59_s16, [#allocation4], %s129_s11, %s129_s11, %s130_s12  }
  0x10   :  { %126 = dma.done.wait [#allocation4], 256  }
  0x11   :  { %127 = vsyncadd [#allocation4], 4294967040 }
  0x12   :  { %69 = vsyncpa [#allocation3], 1 }
  0x13   :  { %70 = vsyncpa [#allocation4], 1 }

</bundles_post_ra>
